<compile_context>
chip_gen: v7x
topology: tpu7x:2x2x1
jax: 0.10.0
libtpu: 0.0.40
codegen_flags: <defaults>
</compile_context>

<pallas_src>
import functools

import jax
import jax.numpy as jnp
import numpy as np
from jax import lax
from jax.experimental import pallas as pl
from jax.experimental.pallas import tpu as pltpu


def _conv_block_kernel(x_ref, scale_ref, shift_ref, w_ref, b_ref, o_ref, xpad_ref,
                       *, cin, cout, pool):
    # x_ref:     (Nb, H, W*Cin)       lane-packed batch block (channel-minor per pixel)
    # scale_ref: (1, 1, W*Cin)        fused BN scale = gamma/sqrt(var+eps), tiled per pixel
    # shift_ref: (1, 1, W*Cin)        fused BN shift = beta - mean*scale, tiled per pixel
    # w_ref:     (3, W*Cin, W*Cout)   banded conv weights, one band matrix per kh tap
    # b_ref:     (1, W*Cout)          conv bias, tiled per pixel
    # o_ref:     (Nb, Hp, W*Cout)     pooled output slab (W-window max at every position;
    #                                 the wrapper keeps every pool-th Cout group)
    # xpad_ref:  (Nb, H+2, W*Cin)     VMEM scratch: activations with 1-row zero halo in H
    Nb, H, WC = x_ref.shape
    W = WC // cin
    WCo = W * cout
    Hp = H // pool
    f32 = jnp.float32

    # Zero only the two halo rows (the W-direction zero padding lives in the banded weights).
    zrow = jnp.zeros((Nb, 1, WC), f32)
    xpad_ref[:, 0:1, :] = zrow
    xpad_ref[:, H + 1:H + 2, :] = zrow

    # Fused BatchNorm (precomputed affine) + ReLU, written once into the padded interior.
    xn = jnp.maximum(x_ref[...] * scale_ref[...] + shift_ref[...], 0.0)
    xpad_ref[:, 1:H + 1, :] = xn

    # 3x3 conv = 3 MXU matmuls: for each kh tap a sublane-shifted view of xpad is
    # multiplied by a banded (W*Cin, W*Cout) matrix carrying the kw shifts.  f32 accum.
    y = jnp.dot(xpad_ref[:, 0:H, :].reshape(Nb * H, WC), w_ref[0],
                preferred_element_type=f32)
    for kh in range(1, 3):
        y = y + jnp.dot(xpad_ref[:, kh:kh + H, :].reshape(Nb * H, WC), w_ref[kh],
                        preferred_element_type=f32)
    y = y + b_ref[...]                                        # (Nb*H, W*Cout)

    # MaxPool over H: leading-dim reshape keeps the lane axis intact; max over the
    # small window via static slices.
    yr = y.reshape(Nb * Hp, pool, WCo)
    yh = yr[:, 0, :]
    for p in range(1, pool):
        yh = jnp.maximum(yh, yr[:, p, :])                     # (Nb*Hp, W*Cout)

    # MaxPool over W via lane rolls (XLU slot): after the rolls, the Cout group at
    # position w holds max_{k<pool} yh[w+k].  Only positions w = wp*pool are kept by the
    # wrapper, and for those w+k <= W-1, so the circular wrap-around never contaminates a
    # kept position.
    m = yh
    for k in range(1, pool):
        m = jnp.maximum(m, pltpu.roll(yh, (W - k) * cout, axis=1))

    # Single dense (multiple-of-128-lane here) store of the whole block.
    o_ref[...] = m.reshape(Nb, Hp, WCo).astype(o_ref.dtype)


def _round_up(v, m):
    return ((v + m - 1) // m) * m


def _vmem_block_bytes(nb, H, W, Cin, Cout, pool):
    """Approximate padded per-step VMEM footprint (f32, incl. double buffering)."""
    Hp = H // pool
    lane_in = _round_up(W * Cin, 128)
    lane_out = _round_up(W * Cout, 128)
    x_blk = 2 * nb * _round_up(H, 8) * lane_in * 4
    out_blk = 2 * nb * _round_up(Hp, 8) * lane_out * 4
    xpad = nb * _round_up(H + 2, 8) * lane_in * 4
    weights = 2 * 3 * _round_up(W * Cin, 8) * lane_out * 4
    return x_blk + out_blk + xpad + weights


def _vmem_budget_and_limit():
    """Generation-aware VMEM numbers (64-MiB v7x vs 128-MiB v5e/v6e)."""
    try:
        cap = int(pltpu.get_tpu_info().vmem_capacity_bytes)
    except Exception:  # fall back to the smallest (v7x-sized) VMEM
        cap = 64 * 1024 * 1024
    # <= ~48 MiB on 64-MiB parts, ~96 MiB on 128-MiB parts; leave headroom for Mosaic.
    limit = min(int(0.75 * cap), cap - 8 * 1024 * 1024)
    budget = int(0.40 * cap)
    return budget, limit


def _pick_batch_block(N, H, W, Cin, Cout, pool, budget_bytes):
    """Largest divisor of N that fits VMEM *and* keeps >=2 (target 4) grid steps."""
    fit = 1
    for nb in range(1, N + 1):
        if N % nb == 0 and _vmem_block_bytes(nb, H, W, Cin, Cout, pool) <= budget_bytes:
            fit = nb
    steps_wanted = 4 if N >= 4 else min(N, 2)
    cap = max(1, N // steps_wanted)
    best = 1
    for nb in range(1, min(fit, cap) + 1):
        if N % nb == 0:
            best = nb
    return best


def conv_block_forward(x_nchw, gamma, beta, conv_w, conv_b, pool, eps=1e-5,
                       batch_block=None):
    """ConvBlock forward.  x_nchw: (N, Cin, H, W) f32 -> (N, Cout, H//pool, W//pool)."""
    N, Cin, H, W = x_nchw.shape
    Cout = conv_w.shape[0]
    assert H % pool == 0 and W % pool == 0
    Hp, Wp = H // pool, W // pool

    # One NCHW->NHWC transpose; training-mode BN statistics (biased variance) come from a
    # single fused sum / sum-of-squares reduction over the same NHWC copy (one HBM pass).
    x_nhwc = jnp.transpose(x_nchw, (0, 2, 3, 1)).astype(jnp.float32)      # (N, H, W, Cin)
    cnt = N * H * W
    s1 = jnp.sum(x_nhwc, axis=(0, 1, 2))
    s2 = jnp.sum(x_nhwc * x_nhwc, axis=(0, 1, 2))
    mean = s1 / cnt
    var = s2 / cnt - mean * mean                                          # biased variance
    inv_std = lax.rsqrt(var + eps)
    scale = gamma.astype(jnp.float32) * inv_std
    shift = beta.astype(jnp.float32) - mean * scale
    scale_row = jnp.tile(scale, W).reshape(1, 1, W * Cin)
    shift_row = jnp.tile(shift, W).reshape(1, 1, W * Cin)

    # Banded conv weights: band_w[kh, w_in*Cin+ci, w_out*Cout+co] = conv_w[co, ci, kh, kw]
    # with kw = w_in - w_out + 1 in {0,1,2}; the missing bands encode the W zero padding.
    w_hwio = jnp.transpose(conv_w, (2, 3, 1, 0)).astype(jnp.float32)      # (3, 3, Cin, Cout)
    ind = np.zeros((3, W, W), np.float32)
    for kw in range(3):
        for w_out in range(W):
            w_in = w_out + kw - 1
            if 0 <= w_in < W:
                ind[kw, w_in, w_out] = 1.0
    band_w = jnp.einsum("kab,hkio->haibo", jnp.asarray(ind), w_hwio)
    band_w = band_w.reshape(3, W * Cin, W * Cout)
    bias_row = jnp.tile(conv_b.astype(jnp.float32), W).reshape(1, W * Cout)

    x_slab = x_nhwc.reshape(N, H, W * Cin)                                # lane-packed input

    budget, vmem_limit = _vmem_budget_and_limit()
    if batch_block is None:
        batch_block = _pick_batch_block(N, H, W, Cin, Cout, pool, budget)
    Nb = batch_block
    assert N % Nb == 0

    kernel = functools.partial(_conv_block_kernel, cin=Cin, cout=Cout, pool=pool)

    out_slab = pl.pallas_call(
        kernel,
        out_shape=jax.ShapeDtypeStruct((N, Hp, W * Cout), jnp.float32),
        grid_spec=pltpu.PrefetchScalarGridSpec(
            num_scalar_prefetch=0,
            grid=(N // Nb,),
            in_specs=[
                pl.BlockSpec((Nb, H, W * Cin), lambda n: (n, 0, 0)),
                pl.BlockSpec((1, 1, W * Cin), lambda n: (0, 0, 0)),
                pl.BlockSpec((1, 1, W * Cin), lambda n: (0, 0, 0)),
                pl.BlockSpec((3, W * Cin, W * Cout), lambda n: (0, 0, 0)),
                pl.BlockSpec((1, W * Cout), lambda n: (0, 0)),
            ],
            out_specs=pl.BlockSpec((Nb, Hp, W * Cout), lambda n: (n, 0, 0)),
            scratch_shapes=[pltpu.VMEM((Nb, H + 2, W * Cin), jnp.float32)],
        ),
        compiler_params=pltpu.CompilerParams(
            dimension_semantics=("parallel",),
            vmem_limit_bytes=vmem_limit,
        ),
    )(x_slab, scale_row, shift_row, band_w, bias_row)

    # Keep every pool-th Cout group (the kernel already holds the window max there)
    # and return to NCHW.
    out = out_slab.reshape(N, Hp, W, Cout)[:, :, ::pool, :]               # (N, Hp, Wp, Cout)
    return jnp.transpose(out, (0, 3, 1, 2))                               # (N, Cout, Hp, Wp)


def conv_block_reference(x, gamma, beta, conv_w, conv_b, pool, eps=1e-5):
    """Pure-JAX reference matching the PyTorch forward (training-mode BN)."""
    mean = jnp.mean(x, axis=(0, 2, 3), keepdims=True)
    var = jnp.var(x, axis=(0, 2, 3), keepdims=True)
    xn = (x - mean) / jnp.sqrt(var + eps) * gamma.reshape(1, -1, 1, 1) \
        + beta.reshape(1, -1, 1, 1)
    xr = jnp.maximum(xn, 0.0)
    y = lax.conv_general_dilated(xr, conv_w, window_strides=(1, 1),
                                 padding=((1, 1), (1, 1)),
                                 dimension_numbers=("NCHW", "OIHW", "NCHW"))
    y = y + conv_b.reshape(1, -1, 1, 1)
    return lax.reduce_window(y, -jnp.inf, lax.max,
                             (1, 1, pool, pool), (1, 1, pool, pool), "VALID")


if __name__ == "__main__":
    key = jax.random.PRNGKey(0)
    N, Cin, H, W = 2, 4, 16, 16
    Cout, pool = 8, 2

    k_x, k_w, k_b = jax.random.split(key, 3)
    x = jax.random.normal(k_x, (N, Cin, H, W), jnp.float32)

    # Deterministic parameter init (shapes per the module's __init__; PyTorch-style ranges).
    gamma = jnp.ones((Cin,), jnp.float32)      # BatchNorm2d default weight
    beta = jnp.zeros((Cin,), jnp.float32)      # BatchNorm2d default bias
    fan_in = Cin * 3 * 3
    bound = 1.0 / (fan_in ** 0.5)
    conv_w = jax.random.uniform(k_w, (Cout, Cin, 3, 3), jnp.float32, -bound, bound)
    conv_b = jax.random.uniform(k_b, (Cout,), jnp.float32, -bound, bound)

    out = conv_block_forward(x, gamma, beta, conv_w, conv_b, pool)
    out = jax.block_until_ready(out)

    ref = conv_block_reference(x, gamma, beta, conv_w, conv_b, pool)
    assert out.shape == (N, Cout, H // pool, W // pool)
    np.testing.assert_allclose(np.asarray(out), np.asarray(ref), rtol=1e-4, atol=1e-4)

    print("KERNEL_OK")
</pallas_src>

<mosaic_0001>
module attributes {stable_mosaic.version = 11 : i64} {
  func.func @_conv_block_kernel(%arg0: i32, %arg1: memref<1x16x64xf32, #tpu.memory_space<vmem>>, %arg2: memref<1x1x64xf32, #tpu.memory_space<vmem>>, %arg3: memref<1x1x64xf32, #tpu.memory_space<vmem>>, %arg4: memref<3x64x128xf32, #tpu.memory_space<vmem>>, %arg5: memref<1x128xf32, #tpu.memory_space<vmem>>, %arg6: memref<1x8x128xf32, #tpu.memory_space<vmem>>, %arg7: memref<1x18x64xf32, #tpu.memory_space<vmem>>) attributes {dimension_semantics = [#tpu.dimension_semantics<parallel>], iteration_bounds = array<i64: 2>, scalar_prefetch = 0 : i64, scratch_operands = 1 : i64, tpu.core_type = #tpu.core_type<tc>, window_params = [{transform_indices = @transform_0, window_bounds = array<i64: 1, 16, 64>}, {pipeline_mode = #tpu.pipeline_mode<synchronous>, transform_indices = @transform_1, window_bounds = array<i64: 1, 1, 64>}, {pipeline_mode = #tpu.pipeline_mode<synchronous>, transform_indices = @transform_2, window_bounds = array<i64: 1, 1, 64>}, {pipeline_mode = #tpu.pipeline_mode<synchronous>, transform_indices = @transform_3, window_bounds = array<i64: 3, 64, 128>}, {pipeline_mode = #tpu.pipeline_mode<synchronous>, transform_indices = @transform_4, window_bounds = array<i64: 1, 128>}, {transform_indices = @transform_5, window_bounds = array<i64: 1, 8, 128>}]} {
    %cst = arith.constant 0.000000e+00 : f32
    %0 = vector.broadcast %cst : f32 to vector<1x1x64xf32>
    %c0 = arith.constant 0 : index
    %c0_0 = arith.constant 0 : index
    %c0_1 = arith.constant 0 : index
    %1 = vector.load %arg7[%c0, %c0_0, %c0_1] : memref<1x18x64xf32, #tpu.memory_space<vmem>>, vector<1x1x64xf32>
    tpu.vector_store %arg7[%c0, %c0_0, %c0_1], %0 {strides = array<i32>} : memref<1x18x64xf32, #tpu.memory_space<vmem>>, vector<1x1x64xf32>,
    %c0_2 = arith.constant 0 : index
    %c17 = arith.constant 17 : index
    %c0_3 = arith.constant 0 : index
    %2 = vector.load %arg7[%c0_2, %c17, %c0_3] : memref<1x18x64xf32, #tpu.memory_space<vmem>>, vector<1x1x64xf32>
    tpu.vector_store %arg7[%c0_2, %c17, %c0_3], %0 {strides = array<i32>} : memref<1x18x64xf32, #tpu.memory_space<vmem>>, vector<1x1x64xf32>,
    %c0_4 = arith.constant 0 : index
    %c0_5 = arith.constant 0 : index
    %c0_6 = arith.constant 0 : index
    %3 = vector.load %arg1[%c0_4, %c0_5, %c0_6] : memref<1x16x64xf32, #tpu.memory_space<vmem>>, vector<1x16x64xf32>
    %c0_7 = arith.constant 0 : index
    %c0_8 = arith.constant 0 : index
    %c0_9 = arith.constant 0 : index
    %4 = vector.load %arg2[%c0_7, %c0_8, %c0_9] : memref<1x1x64xf32, #tpu.memory_space<vmem>>, vector<1x1x64xf32>
    %5 = vector.broadcast %4 : vector<1x1x64xf32> to vector<1x16x64xf32>
    %6 = arith.mulf %3, %5 : vector<1x16x64xf32>
    %c0_10 = arith.constant 0 : index
    %c0_11 = arith.constant 0 : index
    %c0_12 = arith.constant 0 : index
    %7 = vector.load %arg3[%c0_10, %c0_11, %c0_12] : memref<1x1x64xf32, #tpu.memory_space<vmem>>, vector<1x1x64xf32>
    %8 = vector.broadcast %7 : vector<1x1x64xf32> to vector<1x16x64xf32>
    %9 = arith.addf %6, %8 : vector<1x16x64xf32>
    %cst_13 = arith.constant 0.000000e+00 : f32
    %10 = vector.broadcast %cst_13 : f32 to vector<1x16x64xf32>
    %11 = arith.maximumf %9, %10 : vector<1x16x64xf32>
    %c0_14 = arith.constant 0 : index
    %c1 = arith.constant 1 : index
    %c0_15 = arith.constant 0 : index
    %12 = vector.load %arg7[%c0_14, %c1, %c0_15] : memref<1x18x64xf32, #tpu.memory_space<vmem>>, vector<1x16x64xf32>
    tpu.vector_store %arg7[%c0_14, %c1, %c0_15], %11 {strides = array<i32>} : memref<1x18x64xf32, #tpu.memory_space<vmem>>, vector<1x16x64xf32>,
    %c0_16 = arith.constant 0 : index
    %c0_17 = arith.constant 0 : index
    %c0_18 = arith.constant 0 : index
    %13 = vector.load %arg7[%c0_16, %c0_17, %c0_18] : memref<1x18x64xf32, #tpu.memory_space<vmem>>, vector<1x16x64xf32>
    %14 = vector.shape_cast %13 : vector<1x16x64xf32> to vector<16x64xf32>
    %c0_19 = arith.constant 0 : index
    %c0_20 = arith.constant 0 : index
    %c0_21 = arith.constant 0 : index
    %15 = vector.load %arg4[%c0_19, %c0_20, %c0_21] : memref<3x64x128xf32, #tpu.memory_space<vmem>>, vector<1x64x128xf32>
    %16 = vector.shape_cast %15 : vector<1x64x128xf32> to vector<64x128xf32>
    %cst_22 = arith.constant dense<0.000000e+00> : vector<16x128xf32>
    %17 = tpu.matmul %14, %16, %cst_22 {dimension_numbers = #tpu.dot_dimension_numbers<[1], [0], [0], [1], [0, 0, 1, 1], [], []>} : vector<16x64xf32>, vector<64x128xf32>, vector<16x128xf32> -> vector<16x128xf32>
    %c0_23 = arith.constant 0 : index
    %c1_24 = arith.constant 1 : index
    %c0_25 = arith.constant 0 : index
    %18 = vector.load %arg7[%c0_23, %c1_24, %c0_25] : memref<1x18x64xf32, #tpu.memory_space<vmem>>, vector<1x16x64xf32>
    %19 = vector.shape_cast %18 : vector<1x16x64xf32> to vector<16x64xf32>
    %c1_26 = arith.constant 1 : index
    %c0_27 = arith.constant 0 : index
    %c0_28 = arith.constant 0 : index
    %20 = vector.load %arg4[%c1_26, %c0_27, %c0_28] : memref<3x64x128xf32, #tpu.memory_space<vmem>>, vector<1x64x128xf32>
    %21 = vector.shape_cast %20 : vector<1x64x128xf32> to vector<64x128xf32>
    %cst_29 = arith.constant dense<0.000000e+00> : vector<16x128xf32>
    %22 = tpu.matmul %19, %21, %cst_29 {dimension_numbers = #tpu.dot_dimension_numbers<[1], [0], [0], [1], [0, 0, 1, 1], [], []>} : vector<16x64xf32>, vector<64x128xf32>, vector<16x128xf32> -> vector<16x128xf32>
    %23 = arith.addf %17, %22 : vector<16x128xf32>
    %c0_30 = arith.constant 0 : index
    %c2 = arith.constant 2 : index
    %c0_31 = arith.constant 0 : index
    %24 = vector.load %arg7[%c0_30, %c2, %c0_31] : memref<1x18x64xf32, #tpu.memory_space<vmem>>, vector<1x16x64xf32>
    %25 = vector.shape_cast %24 : vector<1x16x64xf32> to vector<16x64xf32>
    %c2_32 = arith.constant 2 : index
    %c0_33 = arith.constant 0 : index
    %c0_34 = arith.constant 0 : index
    %26 = vector.load %arg4[%c2_32, %c0_33, %c0_34] : memref<3x64x128xf32, #tpu.memory_space<vmem>>, vector<1x64x128xf32>
    %27 = vector.shape_cast %26 : vector<1x64x128xf32> to vector<64x128xf32>
    %cst_35 = arith.constant dense<0.000000e+00> : vector<16x128xf32>
    %28 = tpu.matmul %25, %27, %cst_35 {dimension_numbers = #tpu.dot_dimension_numbers<[1], [0], [0], [1], [0, 0, 1, 1], [], []>} : vector<16x64xf32>, vector<64x128xf32>, vector<16x128xf32> -> vector<16x128xf32>
    %29 = arith.addf %23, %28 : vector<16x128xf32>
    %c0_36 = arith.constant 0 : index
    %c0_37 = arith.constant 0 : index
    %30 = vector.load %arg5[%c0_36, %c0_37] : memref<1x128xf32, #tpu.memory_space<vmem>>, vector<1x128xf32>
    %31 = vector.broadcast %30 : vector<1x128xf32> to vector<16x128xf32>
    %32 = arith.addf %29, %31 : vector<16x128xf32>
    %33 = vector.shape_cast %32 : vector<16x128xf32> to vector<8x2x128xf32>
    %34 = vector.extract_strided_slice %33 {offsets = [0, 0, 0], sizes = [8, 1, 128], strides = [1, 1, 1]} : vector<8x2x128xf32> to vector<8x1x128xf32>
    %35 = vector.shape_cast %34 : vector<8x1x128xf32> to vector<8x128xf32>
    %36 = vector.extract_strided_slice %33 {offsets = [0, 1, 0], sizes = [8, 1, 128], strides = [1, 1, 1]} : vector<8x2x128xf32> to vector<8x1x128xf32>
    %37 = vector.shape_cast %36 : vector<8x1x128xf32> to vector<8x128xf32>
    %38 = arith.maximumf %35, %37 : vector<8x128xf32>
    %c120_i32 = arith.constant 120 : i32
    %39 = tpu.dynamic_rotate %38 by %c120_i32 dim 1 : vector<8x128xf32>, i32 -> vector<8x128xf32>
    %40 = arith.maximumf %38, %39 : vector<8x128xf32>
    %41 = vector.shape_cast %40 : vector<8x128xf32> to vector<1x8x128xf32>
    %c0_38 = arith.constant 0 : index
    %c0_39 = arith.constant 0 : index
    %c0_40 = arith.constant 0 : index
    %42 = vector.load %arg6[%c0_38, %c0_39, %c0_40] : memref<1x8x128xf32, #tpu.memory_space<vmem>>, vector<1x8x128xf32>
    tpu.vector_store %arg6[%c0_38, %c0_39, %c0_40], %41 {strides = array<i32>} : memref<1x8x128xf32, #tpu.memory_space<vmem>>, vector<1x8x128xf32>,
    return
  }
  func.func @transform_0(%arg0: i32) -> (i32, i32, i32) {
    %c0_i32 = arith.constant 0 : i32
    %c0_i32_0 = arith.constant 0 : i32
    %c0_i32_1 = arith.constant 0 : i32
    return %arg0, %c0_i32, %c0_i32_0 : i32, i32, i32
  }
  func.func @transform_1(%arg0: i32) -> (i32, i32, i32) {
    %c0_i32 = arith.constant 0 : i32
    %c0_i32_0 = arith.constant 0 : i32
    %c0_i32_1 = arith.constant 0 : i32
    %c0_i32_2 = arith.constant 0 : i32
    return %c0_i32, %c0_i32_0, %c0_i32_1 : i32, i32, i32
  }
  func.func @transform_2(%arg0: i32) -> (i32, i32, i32) {
    %c0_i32 = arith.constant 0 : i32
    %c0_i32_0 = arith.constant 0 : i32
    %c0_i32_1 = arith.constant 0 : i32
    %c0_i32_2 = arith.constant 0 : i32
    return %c0_i32, %c0_i32_0, %c0_i32_1 : i32, i32, i32
  }
  func.func @transform_3(%arg0: i32) -> (i32, i32, i32) {
    %c0_i32 = arith.constant 0 : i32
    %c0_i32_0 = arith.constant 0 : i32
    %c0_i32_1 = arith.constant 0 : i32
    %c0_i32_2 = arith.constant 0 : i32
    return %c0_i32, %c0_i32_0, %c0_i32_1 : i32, i32, i32
  }
  func.func @transform_4(%arg0: i32) -> (i32, i32) {
    %c0_i32 = arith.constant 0 : i32
    %c0_i32_0 = arith.constant 0 : i32
    %c0_i32_1 = arith.constant 0 : i32
    return %c0_i32, %c0_i32_0 : i32, i32
  }
  func.func @transform_5(%arg0: i32) -> (i32, i32, i32) {
    %c0_i32 = arith.constant 0 : i32
    %c0_i32_0 = arith.constant 0 : i32
    %c0_i32_1 = arith.constant 0 : i32
    return %arg0, %c0_i32, %c0_i32_0 : i32, i32, i32
  }
}

</mosaic_0001>

<bundles_post_ra>
// kernel: tpu_custom_call.1
= control target key start
LH: loop header
LB: loop body
LE: loop exit
PB: predicated region body
PF: predicated region fallthrough
CT: control target
= control target key end

     0   :  { %10 = vsyncpa [#allocation4], 0  ;;  %s1543_s0 = inlined_call_operand.hbm [shape: f32[2,16,64], index: 0, kind: input, shape index: {}]   ;;  %s1544_s1 = inlined_call_operand.vmem [shape: f32[1,1,64], index: 1, kind: input, shape index: {}]   ;;  %s1545_s2 = inlined_call_operand.vmem [shape: f32[1,1,64], index: 2, kind: input, shape index: {}]   ;;  %s1546_s3 = inlined_call_operand.hbm [shape: f32[3,64,128], index: 3, kind: input, shape index: {}]   ;;  %s1547_s4 = inlined_call_operand.vmem [shape: f32[1,128], index: 4, kind: input, shape index: {}]   ;;  %s1548_s5 = inlined_call_operand.hbm [shape: f32[2,8,128], index: 5, kind: output, shape index: {}]  }
   0x1   :  { %12 = vsyncpa [#allocation4 + $0x1], 0 }
   0x2   :  { %13 = vsyncpa [#allocation7], 0 }
   0x3   :  { %14 = vsyncpa [#allocation5], 0 }
   0x4   :  { %16 = vsyncpa [#allocation5 + $0x1], 0  ;;  %s1288_s18 = smov 0   ;;  %s1290_s19 = smov 0  }
   0x5   :  { %s1292_s20 = smov 0   ;;  %s1294_s21 = smov 0  }
   0x6 LB: > { %s1309_s22 = sadd.s32 4294967295, %s1248_s21   ;;  %s886_s23 = sadd.s32 4294967294, %s1248_s21   ;;  %s1248_s21 = sphi %s1294_s21, %s1568_s21   ;;  %s1244_s20 = sphi %s1292_s20, %s1567_s20   ;;  %s1240_s19 = sphi %s1290_s19, %s1566_s19   ;;  %s1236_s18 = sphi %s1288_s18, %s1565_s18  }
   0x7   : > { %p42_p0 = scmp.ne.s32.totalorder %s1240_s19, %s1236_s18  ;;  %p1549_p1 = scmp.eq.s32.totalorder %s1309_s22, 0 }
   0x8   : > { %p156_p3 = scmp.eq.s32.totalorder %s886_s23, 1  ;;  %p887_p5 = scmp.ge.s32.totalorder %s1248_s21, 1 }
   0x9   : > { %p1318_p4 = por %p1549_p1, %p42_p0  ;;  %p163_p7 = scmp.lt.s32.totalorder %s1248_s21, 3 }
   0xa   : > { %p1323_p6 = por %p156_p3, %p42_p0  ;;  %s1250_s27 = smov [#allocation6]  }
   0xb   : > { %s1552_s24 = scalar_select %p1318_p4, 1, 0 }
   0xc   : > { %s1553_s25 = scalar_select %p1323_p6, 1, 0 }
   0xd   : > { %p1328_p8 = pnand %p887_p5, %p163_p7  ;;  %s181_s28 = sshll.u32 %s1250_s27, 4  ;;  %s1332_s28 = int_to_ptr.vmem [resolvable:$true] %s181_s28 }
   0xe   : > { %s1344_s30 = sadd.s32 1, %s1248_s21   ;;  %s29_s6 = sadd.s32 1, %s1244_s20 }
   0xf   : > { %s1554_s26 = scalar_select %p1328_p8, 1, 0 }
  0x10   : > { %p1066_p9 = pneg %p1328_p8  ;;  %s26_s7 = ssub.s32 %s1248_s21, %s1344_s30 }
  0x11   : > { %s1120_s10 = scalar_lea.hbm %s1546_s3, 3072 }
  0x12   : > { %p1339_p11 = pnand %p1066_p9, %p1549_p1  ;;  %p1121_p12 = scmp.ne.s32.totalorder %s1546_s3, %s1120_s10 }
  0x13   : > { %p1127_p5 = scmp.lt.u32.totalorder %s1120_s10, %s1546_s3 }
  0x14   : > { %p1122_p13 = pneg %p1339_p11 }
  0x16   : > { %p1123_p0 = pnand %p1122_p13, %p1121_p12 }
  0x18   : > { %p1124_p3 = pneg %p1123_p0 }
  0x1a   : > { %p1129_p7 = pnand %p1127_p5, %p1124_p3 }
  0x1c   : > { %1132 = shalt.err (!%p1129_p7)
}
  0x1d   : > { %s1133_s15 = scalar_lea.vmem %s1332_s28, 3072  ;;  %p1141_p2 = scmp.lt.s32.totalorder %s1332_s28, %s1332_s28 }
  0x1e   : > { %p1134_p9 = scmp.ne.s32.totalorder %s1332_s28, %s1133_s15  ;;  %p1142_p6 = scmp.lt.s32.totalorder %s1133_s15, %s1133_s15 }
  0x20   : > { %p1136_p10 = pnand %p1134_p9, %p1122_p13  ;;  %p1143_p4 = por %p1142_p6, %p1141_p2 }
  0x22   : > { %p1137_p1 = pneg %p1136_p10 }
  0x24   : > { %p1144_p8 = pnand %p1143_p4, %p1137_p1 }
  0x26   : > { %1147 = shalt.err (!%p1144_p8)
}
  0x27   : > { %s1251_s16 = smov 128   ;;  %s1252_s17 = smov 8  }
  0x28   : > { %1069 = dma.hbm_to_vmem [thread:$0]  (!%p1339_p11), %s1546_s3, 3072, %s1332_s28, [#allocation7], %s1251_s16, %s1251_s16, %s1252_s17  }
  0x29   : > { %p27_p1 = scmp.eq.s32.totalorder %s26_s7, 0  ;;  %p36_p2 = scmp.ne.s32.totalorder %s1244_s20, %s1240_s19 }
  0x2a   : > { %p37_p4 = scmp.eq.s32.totalorder %s1248_s21, 0  ;;  %p1079_p6 = scmp.lt.s32.totalorder %s1248_s21, 2 }
  0x2b   : > { %s1378_s8 = scalar_select %p27_p1, %s1244_s20, %s29_s6  }
  0x2c   : > { %p38_p8 = por %p37_p4, %p36_p2  ;;  %p1556_p10 = scmp.eq.s32.totalorder %s1309_s22, 1 }
  0x2d   : > { %s198_s29 = sand.u32 1, %s1244_s20   ;;  %s918_s10 = sshll.u32 %s1248_s21, 8 }
  0x2e   : > { %p1382_p12 = por %p1556_p10, %p36_p2  ;;  %s890_s11 = sshll.u32 %s198_s29, 4 }
  0x2f   : > { %s1391_s14 = scalar_lea.hbm %s1543_s0, %s918_s10  ;;  %s202_s28 = scalar_lea.vmem [#allocation3], %s890_s11 }
  0x30   : > { %s209_s6 = sshll.u32 %s202_s28, 4  ;;  %p1393_p11 = pnand %p1079_p6, %p38_p8  ;;  %s1397_s6 = int_to_ptr.vmem [resolvable:$true] %s209_s6 }
  0x31   : > { %s1399_s15 = scalar_lea.sflag [#allocation4], %s198_s29  ;;  %s1148_s23 = scalar_lea.hbm %s1391_s14, 256 }
  0x32   : > { %p1149_p13 = scmp.ne.s32.totalorder %s1391_s14, %s1148_s23  ;;  %p1150_p0 = pneg %p1393_p11 }
  0x33   : > { %s1153_s11 = scalar_lea.hbm %s1543_s0, 512  ;;  %p1154_p7 = scmp.lt.u32.totalorder %s1391_s14, %s1543_s0 }
  0x34   : > { %p1151_p3 = pnand %p1150_p0, %p1149_p13  ;;  %p1155_p9 = scmp.lt.u32.totalorder %s1153_s11, %s1148_s23 }
  0x35   : > { %p1157_p2 = scmp.lt.u32.totalorder %s1148_s23, %s1391_s14 }
  0x36   : > { %p1152_p5 = pneg %p1151_p3  ;;  %p1156_p1 = por %p1155_p9, %p1154_p7 }
  0x38   : > { %p1158_p4 = por %p1157_p2, %p1156_p1 }
  0x3a   : > { %p1159_p6 = pnand %p1158_p4, %p1152_p5 }
  0x3c   : > { %1162 = shalt.err (!%p1159_p6)
}
  0x3d   : > { %s1163_s29 = scalar_lea.vmem %s1397_s6, 256  ;;  %s1253_s28 = smov [#allocation3]  }
  0x3e   : > { %p1164_p8 = scmp.ne.s32.totalorder %s1397_s6, %s1163_s29  ;;  %s1168_s27 = sshll.u32 %s1253_s28, 4  ;;  %s1169_s27 = int_to_ptr.vmem [resolvable:$false] %s1168_s27 }
  0x3f   : > { %s1170_s10 = scalar_lea.vmem %s1169_s27, 512  ;;  %p1171_p3 = scmp.lt.s32.totalorder %s1397_s6, %s1169_s27 }
  0x40   : > { %p1166_p10 = pnand %p1164_p8, %p1150_p0  ;;  %p1172_p7 = scmp.lt.s32.totalorder %s1170_s10, %s1163_s29 }
  0x42   : > { %p1167_p13 = pneg %p1166_p10  ;;  %p1173_p9 = por %p1172_p7, %p1171_p3 }
  0x44   : > { %p1174_p1 = pnand %p1173_p9, %p1167_p13 }
  0x46   : > { %1177 = shalt.err (!%p1174_p1)
}
  0x47   : > { %1073 = dma.hbm_to_vmem [thread:$0]  (!%p1393_p11), %s1391_s14, 256, %s1397_s6, %s1399_s15, %s1251_s16, %s1251_s16, %s1252_s17  }
  0x48   : > { %p1559_p0 = scmp.ne.s32.totalorder %s1554_s26, 0 }
  0x49   : > { %s1433_s23 = sand.u32 (!%p1559_p0), 1, %s1240_s19   ;;  %p1560_p5 = scmp.ne.s32.totalorder (!%p1559_p0), %s1552_s24, 0 }
  0x4a   : > { %221 = sbr.rel (%p1559_p0) target bundleno = 500 (0x1f4), region = 40  ;;  %s894_s11 = sshll.u32 (!%p1559_p0), %s1433_s23, 4 }
  0x4b   : > { %s224_s12 = scalar_lea.sflag (!%p1559_p0), [#allocation4], %s1433_s23  ;;  %s227_s13 = scalar_lea.vmem (!%p1559_p0), [#allocation3], %s894_s11 }
  0x51   : > { %1223 = dma.done.wait (%p1560_p5), %s224_s12, 256  }
  0x52   : > { %1225 = vsyncadd (%p1560_p5), %s224_s12, 4294967040  ;;  %p1561_p2 = scmp.eq.s32.totalorder %s1309_s22, 0 }
  0x54   : > { %1227 = dma.done.wait (%p1561_p2), [#allocation7], 3072   ;;  %p1562_p11 = pmov %p1561_p2 }
  0x55   : > { %vm258_vm0 = vcmask 516096   ;;  %v1254_v0 = vmov 0.0   ;;  %v288_v1 = vld [vmem:[#allocation6] sm:$0xff]  ;;  %v289_v2 = vld [vmem:[#allocation6 + $0x8] sm:$0xff]  ;;  %v290_v3 = vld [vmem:[#allocation6 + $0x10] sm:$0xff]  ;;  %vm283_vm1 = vcmask 523264   ;;  %v578_v57 = vlaneseq }
  0x56   : > { %1229 = vsyncadd (%p1562_p11), [#allocation7], 4294964224  ;;  %259 = vst.msk [vmem:[#allocation2] sm:$0x1] %vm258_vm0, %v1254_v0  ;;  %v1022_v4 = vpack.c.bf16 %v289_v2, %v288_v1  ;;  %v291_v5 = vld [vmem:[#allocation6 + $0x18] sm:$0xff]  ;;  %v292_v7 = vld [vmem:[#allocation6 + $0x20] sm:$0xff] }
  0x57   : > { %260 = vst.msk [vmem:[#allocation2 + $0x11] sm:$0x1] %vm258_vm0, %v1254_v0  ;;  %v1026_v6 = vpack.c.bf16 %v291_v5, %v290_v3  ;;  %v293_v8 = vld [vmem:[#allocation6 + $0x28] sm:$0xff]  ;;  %v299_v9 = vld [vmem:[#allocation6 + $0x40] sm:$0xff]  ;;  %v301_v19 = vld [vmem:[#allocation6 + $0x50] sm:$0xff]  ;;  %v579_v59 = vshrl.u32 %v578_v57, 7 }
  0x58   : > { %1023 = vmatprep.subr.bf16.mxu0 %v1022_v4  ;;  %v300_v10 = vld [vmem:[#allocation6 + $0x48] sm:$0xff]  ;;  %v261_v11 = vld [vmem:[%s227_s13] sm:$0xff]  ;;  %v1030_v16 = vpack.c.bf16 %v293_v8, %v292_v7  ;;  %v302_v20 = vld [vmem:[#allocation6 + $0x58] sm:$0xff]  ;;  %v1255_v55 = vmov 1983009808   ;;  %vm688_vm2 = vcmask 1041409  }
  0x59   : > { %v262_v12 = vld [vmem:[%s227_s13 + $0x8] sm:$0xff]  ;;  %1025 = vmatpush3.bf16.msra.mxu0 %v1022_v4  ;;  %v1006_v13 = vpack.c.bf16 %v300_v10, %v299_v9  ;;  %v294_v21 = vld [vmem:[#allocation6 + $0x30] sm:$0xff]  ;;  %v1010_v23 = vpack.c.bf16 %v302_v20, %v301_v19  ;;  %v303_v24 = vld [vmem:[#allocation6 + $0x60] sm:$0xff]  ;;  %v576_v56 = vunpack.c.l.s4 %v1255_v55  ;;  %vm690_vm3 = vcmask 1042434   ;;  %s1256_s7 = smov 120   ;;  %s896_s15 = sshll.u32 %s1433_s23, 3 }
  0x5a   : > { %v897_v14 = vld [vmem:[%s1544_s1] ss:$0 sm:$0xff]  ;;  %1027 = vmatprep.subr.bf16.mxu0 %v1026_v6  ;;  %v295_v22 = vld [vmem:[#allocation6 + $0x38] sm:$0xff]  ;;  %v305_v32 = vld [vmem:[#allocation6 + $0x70] sm:$0xff]  ;;  %vm692_vm4 = vcmask 1043459   ;;  %vm694_vm5 = vcmask 1044484  }
  0x5b   : > { %v898_v15 = vld [vmem:[%s1545_s2] ss:$0 sm:$0xff]  ;;  %v270_v17 = vmul.f32 %v897_v14, %v261_v11  ;;  %v271_v18 = vmul.f32 %v897_v14, %v262_v12  ;;  %1007 = vmatprep.subr.bf16.mxu1 %v1006_v13  ;;  %v1034_v29 = vpack.c.bf16 %v295_v22, %v294_v21  ;;  %v306_v33 = vld [vmem:[#allocation6 + $0x78] sm:$0xff]  ;;  %v472_v34 = vld [vmem:[#allocation6 + $0x80] sm:$0xff]  ;;  %v577_v58 = vunpack.c.0.s8 %v576_v56  ;;  %s915_s29 = sshll.u32 %s1309_s22, 7  ;;  %s257_s28 = scalar_lea.vmem [#allocation8], %s896_s15 }
  0x5c   : > { %1009 = vmatpush3.bf16.msra.mxu1 %v1006_v13  ;;  %v304_v27 = vld [vmem:[#allocation6 + $0x68] sm:$0xff]  ;;  %v1018_v36 = vpack.c.bf16 %v306_v33, %v305_v32  ;;  %v474_v38 = vld [vmem:[#allocation6 + $0x90] sm:$0xff]  ;;  %v475_v39 = vld [vmem:[#allocation6 + $0x98] sm:$0xff]  ;;  %vm696_vm6 = vcmask 1045509   ;;  %vm698_vm7 = vcmask 1046534   ;;  %vm700_vm8 = vcmask 1047559   ;;  %s1498_s12 = scalar_lea.hbm %s1548_s5, %s915_s29 }
  0x5d   : > { %v279_v25 = vadd.f32 %v898_v15, %v270_v17  ;;  %v280_v26 = vadd.f32 %v898_v15, %v271_v18  ;;  %1029 = vmatpush3.bf16.msra.mxu0 %v1026_v6  ;;  %1011 = vmatprep.subr.bf16.mxu1 %v1010_v23  ;;  %v1014_v28 = vpack.c.bf16 %v304_v27, %v303_v24  ;;  %v473_v35 = vld [vmem:[#allocation6 + $0x88] sm:$0xff]  ;;  %v476_v40 = vld [vmem:[#allocation6 + $0xa0] sm:$0xff]  ;;  %v478_v49 = vld [vmem:[#allocation6 + $0xb0] sm:$0xff]  ;;  %v1462_v15 = vsub.s32 0, %v579_v59  ;;  %s806_s27 = sshll.u32 %s257_s28, 4  ;;  %s793_s22 = scalar_lea.sflag [#allocation5], %s1433_s23  ;;  %s1500_s27 = int_to_ptr.vmem [resolvable:$true] %s806_s27 }
  0x5e   : > { %1031 = vmatprep.subr.bf16.mxu0 %v1030_v16  ;;  %v1038_v37 = vpack.c.bf16 %v473_v35, %v472_v34  ;;  %v1042_v43 = vpack.c.bf16 %v475_v39, %v474_v38  ;;  %v477_v45 = vld [vmem:[#allocation6 + $0xa8] sm:$0xff]  ;;  %v479_v50 = vld [vmem:[#allocation6 + $0xb8] sm:$0xff]  ;;  %v580_v63 = vsub.s32 %v577_v58, %v579_v59  ;;  %s1178_s13 = scalar_lea.vmem %s1500_s27, 128  ;;  %s1257_s24 = smov [#allocation8]  }
  0x5f   : > { %v281_v30 = vmax.f32 %v279_v25, 0.0  ;;  %v282_v31 = vmax.f32 %v280_v26, 0.0  ;;  %v1046_v48 = vpack.c.bf16 %v477_v45, %v476_v40  ;;  %v1050_v51 = vpack.c.bf16 %v479_v50, %v478_v49  ;;  %v905_v61 = vld [vmem:[%s1547_s4] ss:$0 sm:$0xff]  ;;  %p1179_p4 = scmp.ne.s32.totalorder %s1500_s27, %s1178_s13  ;;  %s1182_s26 = sshll.u32 %s1257_s24, 4  ;;  %s1183_s26 = int_to_ptr.vmem [resolvable:$false] %s1182_s26 }
  0x60   : > { %1013 = vmatpush3.bf16.msra.mxu1 %v1010_v23  ;;  %s1184_s16 = scalar_lea.vmem %s1183_s26, 256  ;;  %p1185_p10 = scmp.lt.s32.totalorder %s1500_s27, %s1183_s26 }
  0x61   : > { %284 = vst.msk [vmem:[#allocation2 + $0x1] sm:$0xff] %vm283_vm1, %v281_v30  ;;  %285 = vst.msk [vmem:[#allocation2 + $0x9] sm:$0xff] %vm283_vm1, %v282_v31  ;;  %1033 = vmatpush3.bf16.msra.mxu0 %v1030_v16  ;;  %1015 = vmatprep.subr.bf16.mxu1 %v1014_v28  ;;  %p1180_p6 = pnand %p1179_p4, %p1382_p12  ;;  %p1186_p13 = scmp.lt.s32.totalorder %s1184_s16, %s1178_s13 }
  0x62   : > { %1035 = vmatprep.subr.bf16.mxu0 %v1034_v29 }
  0x63   : > { %p1181_p8 = pneg %p1180_p6  ;;  %p1187_p3 = por %p1186_p13, %p1185_p10 }
  0x64   : > { %1017 = vmatpush3.bf16.msra.mxu1 %v1014_v28 }
  0x65   : > { %1037 = vmatpush3.bf16.msra.mxu0 %v1034_v29  ;;  %1019 = vmatprep.subr.bf16.mxu1 %v1018_v36  ;;  %p1188_p7 = pnand %p1187_p3, %p1181_p8 }
  0x66   : > { %1039 = vmatprep.subr.bf16.mxu0 %v1038_v37 }
  0x68   : > { %v286_v41 = vld [vmem:[#allocation2] sm:$0xff]  ;;  %v287_v42 = vld [vmem:[#allocation2 + $0x8] sm:$0xff]  ;;  %1021 = vmatpush3.bf16.msra.mxu1 %v1018_v36 }
  0x69   : > { %v296_v44 = vld [vmem:[#allocation2 + $0x1] sm:$0xff]  ;;  %984 = vmatprep.mubr.msk.f32.mxu0 %vm283_vm1, %v286_v41  ;;  %v297_v46 = vld [vmem:[#allocation2 + $0x9] sm:$0xff] }
  0x6a   : > { %v469_v47 = vld [vmem:[#allocation2 + $0x2] sm:$0xff]  ;;  %985 = vmatmul.mubr.msk.f32.vlgmr.msra.gmra.mrb[0].mxu0 %vm283_vm1, %v287_v42  ;;  %965 = vmatprep.mubr.msk.f32.mxu1 %vm283_vm1, %v296_v44  ;;  %v470_v52 = vld [vmem:[#allocation2 + $0xa] sm:$0xff] }
  0x6b   : > { %1041 = vmatpush3.bf16.msra.mxu0 %v1038_v37  ;;  %1003 = vmatprep.mubr.msk.f32.mxu0 %vm283_vm1, %v469_v47 }
  0x6c   : > { %1043 = vmatprep.subr.bf16.mxu0 %v1042_v43  ;;  %966 = vmatmul.mubr.msk.f32.vlgmr.msra.gmra.mrb[0].mxu1 %vm283_vm1, %v297_v46 }
  0x6f   : > { %1045 = vmatpush3.bf16.msra.mxu0 %v1042_v43 }
  0x70   : > { %1047 = vmatprep.subr.bf16.mxu0 %v1046_v48 }
  0x73   : > { %1049 = vmatpush3.bf16.msra.mxu0 %v1046_v48 }
  0x74   : > { %1051 = vmatprep.subr.bf16.mxu0 %v1050_v51 }
  0x77   : > { %1053 = vmatpush3.bf16.msra.mxu0 %v1050_v51 }
  0x7a   : > { %1004 = vmatmul.mubr.msk.f32.vlgmr.msra.gmra.mrb[0].mxu0 %vm283_vm1, %v470_v52 }
 0x13f   : > { %v967_v53 = vpop.f32.mrb[0].mxu1 }
 0x140   : > { %v379_v54 = vpop.f32.mrb[1].mxu1 }
 0x14d   : > { %v1005_v60 = vpop.f32.mrb[0].mxu0 }
 0x14e   : > { %v1054_v62 = vadd.f32 %v1005_v60, %v967_v53  ;;  %v552_v0 = vpop.f32.mrb[1].mxu0 }
 0x14f   : > { %v1055_v1 = vadd.f32 %v552_v0, %v379_v54 }
 0x150   : > { %v571_v2 = vadd.f32 %v1054_v62, %v905_v61 }
 0x151   : > { %v570_v3 = vadd.f32 %v1055_v1, %v905_v61 }
 0x152   : > { %v591_v4 = vcombine.high %v571_v2, %v571_v2  ;;  %v598_v5 = vrot.slane %v571_v2, %v580_v63 }
 0x153   : > { %v574_v6 = vcombine.high %v570_v3, %v570_v3  ;;  %v581_v7 = vrot.slane %v570_v3, %v580_v63 }
 0x154   : > { %v605_v8 = vrot.slane %v591_v4, %v580_v63  ;;  %v606_v9 = vcombine.high %v598_v5, %v598_v5  ;;  %v910_v13 = vrot.slane %v598_v5, 9 }
 0x155   : > { %v588_v10 = vrot.slane %v574_v6, %v580_v63  ;;  %v589_v11 = vcombine.high %v581_v7, %v581_v7  ;;  %v906_v12 = vrot.slane %v581_v7, 9 }
 0x156   : > { %v911_v14 = vrot.slane %v606_v9, 9  ;;  %v607_v16 = vcombine.high %v605_v8, %v605_v8  ;;  %v912_v21 = vrot.slane %v605_v8, 9  ;;  %v644_v26 = vmax.f32 %v598_v5, %v910_v13 }
 0x157   : > { %v590_v17 = vcombine.high %v588_v10, %v588_v10  ;;  %v907_v18 = vrot.slane %v589_v11, 9  ;;  %v908_v19 = vrot.slane %v588_v10, 9  ;;  %v640_v20 = vmax.f32 %v581_v7, %v906_v12 }
 0x158   : > { %v913_v25 = vrot.slane %v607_v16, 9  ;;  %v645_v27 = vmax.f32 %v606_v9, %v911_v14  ;;  %v646_v32 = vmax.f32 %v605_v8, %v912_v21  ;;  %v675_v36 = vrot.slane %v644_v26, %v1462_v15 }
 0x159   : > { %v909_v22 = vrot.slane %v590_v17, 9  ;;  %v641_v23 = vmax.f32 %v589_v11, %v907_v18  ;;  %v642_v24 = vmax.f32 %v588_v10, %v908_v19  ;;  %v659_v29 = vrot.slane %v640_v20, %v1462_v15 }
 0x15a   : > { %v647_v33 = vmax.f32 %v607_v16, %v913_v25  ;;  %v679_v38 = vrot.slane %v645_v27, %v1462_v15  ;;  %v683_v40 = vrot.slane %v646_v32, %v1462_v15 }
 0x15b   : > { %v643_v28 = vmax.f32 %v590_v17, %v909_v22  ;;  %v663_v30 = vrot.slane %v641_v23, %v1462_v15  ;;  %v667_v31 = vrot.slane %v642_v24, %v1462_v15 }
 0x15c   : > { %v687_v42 = vrot.slane %v647_v33, %v1462_v15 }
 0x15d   : > { %v671_v34 = vrot.slane %v643_v28, %v1462_v15  ;;  %v689_v35 = vsel %vm688_vm2, %v663_v30, %v659_v29 }
 0x15e   : > { %v691_v37 = vsel %vm690_vm3, %v667_v31, %v689_v35 }
 0x15f   : > { %v693_v39 = vsel %vm692_vm4, %v671_v34, %v691_v37 }
 0x160   : > { %v695_v41 = vsel %vm694_vm5, %v675_v36, %v693_v39 }
 0x161   : > { %v697_v43 = vsel %vm696_vm6, %v679_v38, %v695_v41 }
 0x162   : > { %v699_v44 = vsel %vm698_vm7, %v683_v40, %v697_v43 }
 0x163   : > { %v701_v45 = vsel %vm700_vm8, %v687_v42, %v699_v44 }
 0x164   : > { %703 = vrot.lane.b32.xlu0 %v701_v45, %s1256_s7 }
 0x1d6   : > { %v704_v46 = vpop.permute.xlu0 %703 }
 0x1d7   : > { %v706_v47 = vcombine.high %v704_v46, %v704_v46  ;;  %v713_v48 = vrot.slane %v704_v46, %v580_v63 }
 0x1d9   : > { %v720_v49 = vrot.slane %v706_v47, %v580_v63  ;;  %v721_v50 = vcombine.high %v713_v48, %v713_v48  ;;  %v723_v51 = vrot.slane %v713_v48, 1  ;;  %v735_v52 = vmax.f32 %v640_v20, %v713_v48 }
 0x1db   : > { %v722_v53 = vcombine.high %v720_v49, %v720_v49  ;;  %v724_v54 = vrot.slane %v721_v50, 1  ;;  %v725_v55 = vrot.slane %v720_v49, 1  ;;  %v736_v56 = vmax.f32 %v641_v23, %v723_v51 }
 0x1dc   : > { %v737_v57 = vmax.f32 %v642_v24, %v721_v50  ;;  %v739_v60 = vmax.f32 %v644_v26, %v720_v49  ;;  %v754_v62 = vrot.slane %v735_v52, %v1462_v15 }
 0x1dd   : > { %v726_v58 = vrot.slane %v722_v53, 1  ;;  %v738_v59 = vmax.f32 %v643_v28, %v724_v54  ;;  %v740_v61 = vmax.f32 %v645_v27, %v725_v55  ;;  %v758_v0 = vrot.slane %v736_v56, %v1462_v15 }
 0x1de   : > { %v762_v63 = vrot.slane %v737_v57, %v1462_v15  ;;  %v741_v1 = vmax.f32 %v646_v32, %v722_v53  ;;  %v770_v5 = vrot.slane %v739_v60, %v1462_v15 }
 0x1df   : > { %v766_v2 = vrot.slane %v738_v59, %v1462_v15  ;;  %v742_v3 = vmax.f32 %v647_v33, %v726_v58  ;;  %v783_v4 = vsel %vm688_vm2, %v758_v0, %v754_v62  ;;  %v774_v7 = vrot.slane %v740_v61, %v1462_v15 }
 0x1e0   : > { %v784_v6 = vsel %vm690_vm3, %v762_v63, %v783_v4  ;;  %v778_v9 = vrot.slane %v741_v1, %v1462_v15 }
 0x1e1   : > { %v785_v8 = vsel %vm692_vm4, %v766_v2, %v784_v6  ;;  %v782_v11 = vrot.slane %v742_v3, %v1462_v15 }
 0x1e2   : > { %v786_v10 = vsel %vm694_vm5, %v770_v5, %v785_v8 }
 0x1e3   : > { %v787_v12 = vsel %vm696_vm6, %v774_v7, %v786_v10 }
 0x1e4   : > { %v788_v13 = vsel %vm698_vm7, %v778_v9, %v787_v12 }
 0x1e5   : > { %v789_v14 = vsel %vm700_vm8, %v782_v11, %v788_v13 }
 0x1e6   : > { %791 = vst [vmem:[%s257_s28] sm:$0xff] %v789_v14 }
 0x1e7   : > { %1191 = shalt.err (!%p1188_p7)
}
 0x1e8   : > { %s1192_s23 = scalar_lea.hbm %s1498_s12, 128  ;;  %s1196_s6 = scalar_lea.hbm %s1548_s5, 256 }
 0x1e9   : > { %p1193_p9 = scmp.ne.s32.totalorder %s1498_s12, %s1192_s23  ;;  %p1197_p5 = scmp.lt.u32.totalorder %s1498_s12, %s1548_s5 }
 0x1ea   : > { %p1198_p2 = scmp.lt.u32.totalorder %s1196_s6, %s1192_s23  ;;  %p1200_p4 = scmp.lt.u32.totalorder %s1192_s23, %s1498_s12 }
 0x1eb   : > { %p1194_p1 = pnand %p1193_p9, %p1382_p12 }
 0x1ec   : > { %p1199_p11 = por %p1198_p2, %p1197_p5 }
 0x1ed   : > { %p1195_p0 = pneg %p1194_p1 }
 0x1ee   : > { %p1201_p6 = por %p1200_p4, %p1199_p11 }
 0x1f0   : > { %p1202_p8 = pnand %p1201_p6, %p1195_p0 }
 0x1f2   : > { %1205 = shalt.err (!%p1202_p8)
}
 0x1f3   : > { %1064 = dma.vmem_to_hbm [thread:$0]  (%p1382_p12), %s1500_s27, 128, %s1498_s12, %s793_s22  }
 0x1f4 PF: > { %s818_s29 = sand.u32 1, %s1236_s18   ;;  %p1563_p10 = scmp.ne.s32.totalorder %s1553_s25, 0 }
 0x1f5   : > { %p1564_p13 = scmp.ge.s32.totalorder %s1248_s21, 2  ;;  %s819_s28 = scalar_lea.sflag [#allocation5], %s818_s29 }
 0x1f7   : > { %p1075_p3 = pnand %p1564_p13, %p1563_p10 }
 0x1f9   : > { %1231 = dma.done.wait (!%p1075_p3), %s819_s28, 128  }
 0x1fa   : > { %1233 = vsyncadd (!%p1075_p3), %s819_s28, 4294967168  ;;  %p19_p7 = scmp.ge.s32.totalorder %s1344_s30, 4   ;;  %s1565_s18 = smov %s1240_s19 }
 0x1fb   : > { %s1566_s19 = smov %s1244_s20  ;;  %s1567_s20 = smov %s1378_s8 }
 0x1fc   : > { %s1568_s21 = smov %s1344_s30  ;;  %21 = sbr.rel (!%p19_p7) target bundleno = 6 (0x6), region = 91 }
 0x203   :  { %824 = vsyncpa [#allocation4], 1 }
 0x204   :  { %826 = vsyncpa [#allocation4 + $0x1], 1 }
 0x205   :  { %827 = vsyncpa [#allocation7], 1 }
 0x206   :  { %828 = vsyncpa [#allocation5], 1 }
 0x207   :  { %830 = vsyncpa [#allocation5 + $0x1], 1 }

</bundles_post_ra>
